<compile_context>
chip_gen: v7x
topology: tpu7x:2x2x1
jax: 0.10.0
libtpu: 0.0.40
codegen_flags: <defaults>
</compile_context>

<pallas_src>
import functools
import math

import jax
import jax.numpy as jnp
from jax.experimental import pallas as pl
from jax.experimental.pallas import tpu as pltpu

_NEG_INF = -1e30


def _round_up(x, m):
    return ((x + m - 1) // m) * m


def _pad2d(x, rows, cols):
    return jnp.pad(x, ((0, rows - x.shape[0]), (0, cols - x.shape[1])))


# -----------------------------------------------------------------------------
# Fused Pallas kernel: folded image tower + normalized similarity + softmax
# -----------------------------------------------------------------------------
def _clip_head_kernel(
    pooled_img_ref,   # [Bm, Kp]  bf16  mean-pooled patch rows (zero-padded)
    w_fold_ref,       # [Kp, Ep]  bf16  folded patch_w @ img_proj_w
    b_fold_ref,       # [1,  Ep]  f32   folded bias
    txt_nt_ref,       # [Ep, Tp]  bf16  cached (logit_scale * txt_n).T
    o_ref,            # [Bm, Tp]  f32   softmax probs (padded)
    *,
    n_text,           # number of valid text classes (static)
):
    # ---- single folded image matmul (bf16 MXU, f32 accumulate) ----
    img_feat = (
        jnp.dot(pooled_img_ref[...], w_fold_ref[...],
                preferred_element_type=jnp.float32)
        + b_fold_ref[...]
    )                                                           # [Bm, Ep] f32

    # ---- L2 normalization (eps guards zero/padded rows against NaN/Inf) ----
    inv_norm = jax.lax.rsqrt(
        jnp.sum(img_feat * img_feat, axis=-1, keepdims=True) + 1e-12
    )
    img_n = (img_feat * inv_norm).astype(txt_nt_ref.dtype)      # bf16 for the MXU

    # ---- scaled similarity: logit_scale already folded into txt_nt,
    #      RHS contracts its leading dim -> no in-kernel transpose ----
    logits = jnp.dot(img_n, txt_nt_ref[...],
                     preferred_element_type=jnp.float32)        # [Bm, Tp]

    # ---- mask padded text columns, softmax over the text axis ----
    col = jax.lax.broadcasted_iota(jnp.int32, logits.shape, 1)
    logits = jnp.where(col < n_text, logits, _NEG_INF)
    m = jnp.max(logits, axis=-1, keepdims=True)
    e = jnp.exp(logits - m)
    denom = jnp.sum(e, axis=-1, keepdims=True)
    o_ref[...] = e * pl.reciprocal(denom, approx=True)


# -----------------------------------------------------------------------------
# Parameters (synthetic, deterministically initialized CLIP-style encoders)
# -----------------------------------------------------------------------------
def init_params(key, *, C, ps, width, embed_dim, vocab, seq_len):
    ks = jax.random.split(key, 7)
    patch_dim = C * ps * ps
    return {
        "patch_w": jax.random.normal(ks[0], (patch_dim, width), jnp.float32) * 0.02,
        "patch_b": jnp.zeros((1, width), jnp.float32),
        "img_proj_w": jax.random.normal(ks[1], (width, embed_dim), jnp.float32) * 0.02,
        "img_proj_b": jnp.zeros((1, embed_dim), jnp.float32),
        "tok_emb": jax.random.normal(ks[2], (vocab, width), jnp.float32) * 0.02,
        "pos_emb": jax.random.normal(ks[3], (seq_len, width), jnp.float32) * 0.01,
        "txt_proj_w": jax.random.normal(ks[4], (width, embed_dim), jnp.float32) * 0.02,
        "txt_proj_b": jnp.zeros((1, embed_dim), jnp.float32),
        # CLIP init: logit_scale = exp(ln(1/0.07)) = 1/0.07
        "logit_scale": jnp.full((1, 1), math.exp(math.log(1.0 / 0.07)), jnp.float32),
    }


def prepare_image_weights(params):
    """Fold the two affine image layers, pre-pad, pre-cast to bf16. Done ONCE."""
    patch_dim = params["patch_w"].shape[0]
    embed_dim = params["img_proj_w"].shape[1]
    w_fold = params["patch_w"] @ params["img_proj_w"]                          # [K, E]
    b_fold = params["patch_b"] @ params["img_proj_w"] + params["img_proj_b"]   # [1, E]
    Kp = _round_up(patch_dim, 16)    # bf16 sublane multiple; full-array blocks so no 128 lane pad
    Ep = _round_up(embed_dim, 128)
    return {
        "w_fold": _pad2d(w_fold, Kp, Ep).astype(jnp.bfloat16),
        "b_fold": _pad2d(b_fold, 1, Ep).astype(jnp.float32),
        "Kp": Kp,
        "Ep": Ep,
        "patch_dim": patch_dim,
    }


def prepare_text_features(text_ids, params, Ep):
    """Text tower depends only on the class prompts -> computed once per class set,
    L2-normalized, logit_scale folded in, cached as bf16 [Ep, Tp]."""
    T, L = text_ids.shape
    # TODO(synk): real CLIP pools at the argmax/EOT token; last index matches only
    # fixed-length prompts (true for this synthetic setup).
    pooled_txt = params["tok_emb"][text_ids[:, -1]] + params["pos_emb"][L - 1]  # [T, width]
    txt_feat = pooled_txt @ params["txt_proj_w"] + params["txt_proj_b"]         # [T, E]
    txt_n = txt_feat / jnp.linalg.norm(txt_feat, axis=-1, keepdims=True)
    txt_nt = (params["logit_scale"][0, 0] * txt_n).T                            # [E, T]
    Tp = _round_up(T, 128)
    return _pad2d(txt_nt, Ep, Tp).astype(jnp.bfloat16), T


# -----------------------------------------------------------------------------
# Forward: per-image hot path (one fused pallas_call)
# -----------------------------------------------------------------------------
def clip_with_meta_forward(img, prepared, txt_nt_p, n_text, *, ps):
    """
    img:      [B, C, H, W] float32 (NCHW, PyTorch convention)
    prepared: dict from prepare_image_weights (pre-padded bf16 folded weights)
    txt_nt_p: [Ep, Tp] bf16 cached, scaled, normalized text features (transposed)
    returns:  probs [B, n_text] float32  == logits_per_image.softmax(dim=-1)
    """
    B, C, H, W = img.shape
    nP = (H // ps) * (W // ps)
    patch_dim = C * ps * ps
    assert patch_dim == prepared["patch_dim"]
    Kp, Ep = prepared["Kp"], prepared["Ep"]
    Tp = txt_nt_p.shape[1]

    # glue: unfold NCHW image into patches and mean-pool BEFORE the matmul
    # (mean(X @ W + b) == mean(X) @ W + b; exact, nP x fewer FLOPs)
    patches = (
        img.reshape(B, C, H // ps, ps, W // ps, ps)
        .transpose(0, 2, 4, 1, 3, 5)
        .reshape(B, nP, patch_dim)
    )
    pooled_img = patches.mean(axis=1)                               # [B, patch_dim] f32

    Bp = _round_up(B, 16)                                           # bf16 sublane tile = 16
    pooled_img_p = _pad2d(pooled_img, Bp, Kp).astype(jnp.bfloat16)

    # batch tile: fills the MXU M dim at larger batches, and gives a "parallel"
    # grid axis so both TensorCores run on v7x (harmless on v5e/v6e).
    bm = min(Bp, 256)
    while Bp % bm:
        bm -= 16
    grid = (Bp // bm,)

    kernel = functools.partial(_clip_head_kernel, n_text=n_text)

    probs_p = pl.pallas_call(
        kernel,
        out_shape=jax.ShapeDtypeStruct((Bp, Tp), jnp.float32),
        grid=grid,
        in_specs=[
            pl.BlockSpec((bm, Kp), lambda i: (i, 0)),   # pooled image rows (tiled over batch)
            pl.BlockSpec((Kp, Ep), lambda i: (0, 0)),   # folded weight (resident)
            pl.BlockSpec((1, Ep), lambda i: (0, 0)),    # folded bias
            pl.BlockSpec((Ep, Tp), lambda i: (0, 0)),   # cached scaled text features^T
        ],
        out_specs=pl.BlockSpec((bm, Tp), lambda i: (i, 0)),
        compiler_params=pltpu.CompilerParams(
            dimension_semantics=("parallel",),
            vmem_limit_bytes=32 * 1024 * 1024,
        ),
    )(pooled_img_p, prepared["w_fold"], prepared["b_fold"], txt_nt_p)

    return probs_p[:B, :n_text]


# -----------------------------------------------------------------------------
# Pure-JAX f32 reference (mirrors the original un-fused math) for validation
# -----------------------------------------------------------------------------
def reference_forward(img, text_ids, params, *, ps):
    B, C, H, W = img.shape
    T, L = text_ids.shape
    nP = (H // ps) * (W // ps)
    patch_dim = C * ps * ps
    patches = (
        img.reshape(B, C, H // ps, ps, W // ps, ps)
        .transpose(0, 2, 4, 1, 3, 5)
        .reshape(B * nP, patch_dim)
    )
    patch_feat = patches @ params["patch_w"] + params["patch_b"]
    pooled_img = patch_feat.reshape(B, nP, -1).mean(axis=1)
    img_feat = pooled_img @ params["img_proj_w"] + params["img_proj_b"]
    tok = params["tok_emb"][text_ids] + params["pos_emb"][None, :, :]
    pooled_txt = tok[:, -1, :]
    txt_feat = pooled_txt @ params["txt_proj_w"] + params["txt_proj_b"]
    img_n = img_feat / jnp.linalg.norm(img_feat, axis=-1, keepdims=True)
    txt_n = txt_feat / jnp.linalg.norm(txt_feat, axis=-1, keepdims=True)
    logits = params["logit_scale"][0, 0] * (img_n @ txt_n.T)
    return jax.nn.softmax(logits, axis=-1)


# -----------------------------------------------------------------------------
if __name__ == "__main__":
    B, C, H, W = 2, 3, 16, 16
    ps = 4
    width, embed_dim = 32, 32
    T, L, vocab = 5, 8, 64

    key = jax.random.PRNGKey(0)
    k_img, k_txt, k_par = jax.random.split(key, 3)

    img = jax.random.normal(k_img, (B, C, H, W), jnp.float32)
    text_ids = jax.random.randint(k_txt, (T, L), 0, vocab, jnp.int32)
    params = init_params(
        k_par, C=C, ps=ps, width=width, embed_dim=embed_dim, vocab=vocab, seq_len=L
    )

    # One-time preparation (per weight set / per class set), outside the hot path.
    prepared = prepare_image_weights(params)
    txt_nt_p, n_text = prepare_text_features(text_ids, params, prepared["Ep"])
    txt_nt_p = jax.block_until_ready(txt_nt_p)

    probs = clip_with_meta_forward(img, prepared, txt_nt_p, n_text, ps=ps)
    probs = jax.block_until_ready(probs)
    ref = reference_forward(img, text_ids, params, ps=ps)

    assert probs.shape == (B, T)
    # approx reciprocal -> rows sum to 1 within ~1e-3
    assert bool(jnp.allclose(probs.sum(axis=-1), 1.0, atol=5e-3))
    # bf16 MXU inputs -> compare against the f32 reference at bf16-appropriate tolerance
    assert bool(jnp.allclose(probs, ref, atol=2e-2, rtol=2e-2))
    print("KERNEL_OK")
</pallas_src>

<mosaic_0001>
module attributes {stable_mosaic.version = 11 : i64} {
  func.func @_clip_head_kernel(%arg0: i32, %arg1: memref<16x48xbf16, #tpu.memory_space<vmem>>, %arg2: memref<48x128xbf16, #tpu.memory_space<vmem>>, %arg3: memref<1x128xf32, #tpu.memory_space<vmem>>, %arg4: memref<128x128xbf16, #tpu.memory_space<vmem>>, %arg5: memref<16x128xf32, #tpu.memory_space<vmem>>) attributes {dimension_semantics = [#tpu.dimension_semantics<parallel>], iteration_bounds = array<i64: 1>, scalar_prefetch = 0 : i64, scratch_operands = 0 : i64, tpu.core_type = #tpu.core_type<tc>, window_params = [{transform_indices = @transform_0, window_bounds = array<i64: 16, 48>}, {pipeline_mode = #tpu.pipeline_mode<synchronous>, transform_indices = @transform_1, window_bounds = array<i64: 48, 128>}, {pipeline_mode = #tpu.pipeline_mode<synchronous>, transform_indices = @transform_2, window_bounds = array<i64: 1, 128>}, {pipeline_mode = #tpu.pipeline_mode<synchronous>, transform_indices = @transform_3, window_bounds = array<i64: 128, 128>}, {transform_indices = @transform_4, window_bounds = array<i64: 16, 128>}]} {
    %c0 = arith.constant 0 : index
    %c0_0 = arith.constant 0 : index
    %0 = vector.load %arg1[%c0, %c0_0] : memref<16x48xbf16, #tpu.memory_space<vmem>>, vector<16x48xbf16>
    %c0_1 = arith.constant 0 : index
    %c0_2 = arith.constant 0 : index
    %1 = vector.load %arg2[%c0_1, %c0_2] : memref<48x128xbf16, #tpu.memory_space<vmem>>, vector<48x128xbf16>
    %cst = arith.constant dense<0.000000e+00> : vector<16x128xf32>
    %2 = tpu.matmul %0, %1, %cst {dimension_numbers = #tpu.dot_dimension_numbers<[1], [0], [0], [1], [0, 0, 1, 1], [], []>} : vector<16x48xbf16>, vector<48x128xbf16>, vector<16x128xf32> -> vector<16x128xf32>
    %c0_3 = arith.constant 0 : index
    %c0_4 = arith.constant 0 : index
    %3 = vector.load %arg3[%c0_3, %c0_4] : memref<1x128xf32, #tpu.memory_space<vmem>>, vector<1x128xf32>
    %4 = vector.broadcast %3 : vector<1x128xf32> to vector<16x128xf32>
    %5 = arith.addf %2, %4 : vector<16x128xf32>
    %6 = arith.mulf %5, %5 : vector<16x128xf32>
    %cst_5 = arith.constant dense<0.000000e+00> : vector<16xf32>
    %7 = vector.multi_reduction <add>, %6, %cst_5 [1] : vector<16x128xf32> to vector<16xf32>
    %8 = vector.shape_cast %7 : vector<16xf32> to vector<16x1xf32>
    %cst_6 = arith.constant 9.99999996E-13 : f32
    %9 = vector.broadcast %cst_6 : f32 to vector<16x1xf32>
    %10 = arith.addf %8, %9 : vector<16x1xf32>
    %11 = math.rsqrt %10 : vector<16x1xf32>
    %12 = vector.broadcast %11 : vector<16x1xf32> to vector<16x128xf32>
    %13 = arith.mulf %5, %12 : vector<16x128xf32>
    %14 = arith.truncf %13 : vector<16x128xf32> to vector<16x128xbf16>
    %c0_7 = arith.constant 0 : index
    %c0_8 = arith.constant 0 : index
    %15 = vector.load %arg4[%c0_7, %c0_8] : memref<128x128xbf16, #tpu.memory_space<vmem>>, vector<128x128xbf16>
    %cst_9 = arith.constant dense<0.000000e+00> : vector<16x128xf32>
    %16 = tpu.matmul %14, %15, %cst_9 {dimension_numbers = #tpu.dot_dimension_numbers<[1], [0], [0], [1], [0, 0, 1, 1], [], []>} : vector<16x128xbf16>, vector<128x128xbf16>, vector<16x128xf32> -> vector<16x128xf32>
    %17 = tpu.iota {dimensions = array<i32: 1>} : vector<16x128xi32>
    %c5_i32 = arith.constant 5 : i32
    %18 = vector.broadcast %c5_i32 : i32 to vector<16x128xi32>
    %19 = arith.cmpi slt, %17, %18 : vector<16x128xi32>
    %cst_10 = arith.constant -1.000000e+30 : f32
    %20 = vector.broadcast %cst_10 : f32 to vector<16x128xf32>
    %21 = arith.select %19, %16, %20 : vector<16x128xi1>, vector<16x128xf32>
    %cst_11 = arith.constant dense<0xFF800000> : vector<16xf32>
    %22 = vector.multi_reduction <maximumf>, %21, %cst_11 [1] : vector<16x128xf32> to vector<16xf32>
    %23 = vector.shape_cast %22 : vector<16xf32> to vector<16x1xf32>
    %24 = vector.broadcast %23 : vector<16x1xf32> to vector<16x128xf32>
    %25 = arith.subf %21, %24 : vector<16x128xf32>
    %26 = math.exp %25 : vector<16x128xf32>
    %cst_12 = arith.constant dense<0.000000e+00> : vector<16xf32>
    %27 = vector.multi_reduction <add>, %26, %cst_12 [1] : vector<16x128xf32> to vector<16xf32>
    %28 = vector.shape_cast %27 : vector<16xf32> to vector<16x1xf32>
    %29 = tpu.reciprocal %28 {approx = true} : vector<16x1xf32> -> vector<16x1xf32>
    %30 = vector.broadcast %29 : vector<16x1xf32> to vector<16x128xf32>
    %31 = arith.mulf %26, %30 : vector<16x128xf32>
    %c0_13 = arith.constant 0 : index
    %c0_14 = arith.constant 0 : index
    %32 = vector.load %arg5[%c0_13, %c0_14] : memref<16x128xf32, #tpu.memory_space<vmem>>, vector<16x128xf32>
    tpu.vector_store %arg5[%c0_13, %c0_14], %31 {strides = array<i32>} : memref<16x128xf32, #tpu.memory_space<vmem>>, vector<16x128xf32>,
    return
  }
  func.func @transform_0(%arg0: i32) -> (i32, i32) {
    %c0_i32 = arith.constant 0 : i32
    %c0_i32_0 = arith.constant 0 : i32
    return %arg0, %c0_i32 : i32, i32
  }
  func.func @transform_1(%arg0: i32) -> (i32, i32) {
    %c0_i32 = arith.constant 0 : i32
    %c0_i32_0 = arith.constant 0 : i32
    %c0_i32_1 = arith.constant 0 : i32
    return %c0_i32, %c0_i32_0 : i32, i32
  }
  func.func @transform_2(%arg0: i32) -> (i32, i32) {
    %c0_i32 = arith.constant 0 : i32
    %c0_i32_0 = arith.constant 0 : i32
    %c0_i32_1 = arith.constant 0 : i32
    return %c0_i32, %c0_i32_0 : i32, i32
  }
  func.func @transform_3(%arg0: i32) -> (i32, i32) {
    %c0_i32 = arith.constant 0 : i32
    %c0_i32_0 = arith.constant 0 : i32
    %c0_i32_1 = arith.constant 0 : i32
    return %c0_i32, %c0_i32_0 : i32, i32
  }
  func.func @transform_4(%arg0: i32) -> (i32, i32) {
    %c0_i32 = arith.constant 0 : i32
    %c0_i32_0 = arith.constant 0 : i32
    return %arg0, %c0_i32 : i32, i32
  }
}

</mosaic_0001>

<bundles_post_ra>
// kernel: tpu_custom_call.1
= control target key start
LH: loop header
LB: loop body
LE: loop exit
PB: predicated region body
PF: predicated region fallthrough
CT: control target
= control target key end

     0   :  { %9 = vsyncpa [#allocation3], 0  ;;  %s591_s0 = inlined_call_operand.hbm [shape: bf16[16,48], index: 0, kind: input, shape index: {}]   ;;  %s592_s1 = inlined_call_operand.hbm [shape: bf16[48,128], index: 1, kind: input, shape index: {}]   ;;  %s593_s2 = inlined_call_operand.vmem [shape: f32[1,128], index: 2, kind: input, shape index: {}]   ;;  %s594_s3 = inlined_call_operand.hbm [shape: bf16[128,128], index: 3, kind: input, shape index: {}]   ;;  %s595_s4 = inlined_call_operand.hbm [shape: f32[16,128], index: 4, kind: output, shape index: {}]  }
   0x1   :  { %10 = vsyncpa [#allocation6], 0 }
   0x2   :  { %11 = vsyncpa [#allocation4], 0  ;;  %s489_s15 = smov [#allocation5]   ;;  %s490_s17 = smov [#allocation2]  }
   0x3   :  { %s29_s16 = sshll.u32 %s489_s15, 4  ;;  %s17_s18 = sshll.u32 %s490_s17, 4  ;;  %s30_s16 = int_to_ptr.vmem [resolvable:$true] %s29_s16  ;;  %s524_s18 = int_to_ptr.vmem [resolvable:$true] %s17_s18 }
   0x4   :  { %s395_s21 = scalar_lea.hbm %s592_s1, 384 }
   0x5   :  { %p396_p0 = scmp.ne.s32.totalorder %s592_s1, %s395_s21  ;;  %p399_p1 = scmp.lt.u32.totalorder %s395_s21, %s592_s1 }
   0x7   :  { %p401_p2 = pnand %p399_p1, %p396_p0 }
   0x9   :  { %404 = shalt.err (!%p401_p2)
}
   0xa   :  { %s405_s26 = scalar_lea.vmem %s30_s16, 384  ;;  %p410_p4 = scmp.lt.s32.totalorder %s30_s16, %s30_s16 }
   0xb   :  { %p406_p3 = scmp.ne.s32.totalorder %s30_s16, %s405_s26  ;;  %p411_p5 = scmp.lt.s32.totalorder %s405_s26, %s405_s26 }
   0xd   :  { %p412_p6 = por %p411_p5, %p410_p4 }
   0xf   :  { %p413_p7 = pnand %p412_p6, %p406_p3 }
  0x11   :  { %416 = shalt.err (!%p413_p7)
}
  0x12   :  { %s491_s27 = smov 64   ;;  %s492_s28 = smov 4  }
  0x13   :  { %35 = dma.hbm_to_vmem [thread:$0]  %s592_s1, 384, %s30_s16, [#allocation6], %s491_s27, %s491_s27, %s492_s28  }
  0x14   :  { %s417_s7 = scalar_lea.hbm %s591_s0, 128 }
  0x15   :  { %p418_p8 = scmp.ne.s32.totalorder %s591_s0, %s417_s7  ;;  %p421_p9 = scmp.lt.u32.totalorder %s417_s7, %s591_s0 }
  0x17   :  { %p423_p10 = pnand %p421_p9, %p418_p8 }
  0x19   :  { %426 = shalt.err (!%p423_p10)
}
  0x1a   :  { %s427_s12 = scalar_lea.vmem %s524_s18, 128  ;;  %p432_p12 = scmp.lt.s32.totalorder %s524_s18, %s524_s18 }
  0x1b   :  { %p428_p11 = scmp.ne.s32.totalorder %s524_s18, %s427_s12  ;;  %p433_p13 = scmp.lt.s32.totalorder %s427_s12, %s427_s12 }
  0x1d   :  { %p434_p0 = por %p433_p13, %p432_p12 }
  0x1f   :  { %p435_p1 = pnand %p434_p0, %p428_p11 }
  0x21   :  { %438 = shalt.err (!%p435_p1)
}
  0x22   :  { %23 = dma.hbm_to_vmem [thread:$0]  %s591_s0, 128, %s524_s18, [#allocation3], %s491_s27, %s491_s27, %s492_s28  }
  0x23   :  { %s493_s14 = smov [#allocation7]   ;;  %s439_s19 = scalar_lea.hbm %s594_s3, 1024 }
  0x24   :  { %s43_s15 = sshll.u32 %s493_s14, 4  ;;  %p440_p2 = scmp.ne.s32.totalorder %s594_s3, %s439_s19  ;;  %s44_s15 = int_to_ptr.vmem [resolvable:$true] %s43_s15 }
  0x25   :  { %p443_p3 = scmp.lt.u32.totalorder %s439_s19, %s594_s3 }
  0x27   :  { %p445_p4 = pnand %p443_p3, %p440_p2 }
  0x29   :  { %448 = shalt.err (!%p445_p4)
}
  0x2a   :  { %s449_s24 = scalar_lea.vmem %s44_s15, 1024  ;;  %p454_p6 = scmp.lt.s32.totalorder %s44_s15, %s44_s15 }
  0x2b   :  { %p450_p5 = scmp.ne.s32.totalorder %s44_s15, %s449_s24  ;;  %p455_p7 = scmp.lt.s32.totalorder %s449_s24, %s449_s24 }
  0x2d   :  { %p456_p8 = por %p455_p7, %p454_p6 }
  0x2f   :  { %p457_p9 = pnand %p456_p8, %p450_p5 }
  0x31   :  { %460 = shalt.err (!%p457_p9)
}
  0x32   :  { %49 = dma.hbm_to_vmem [thread:$0]  %s594_s3, 1024, %s44_s15, [#allocation6], %s491_s27, %s491_s27, %s492_s28  }
  0x33   :  { %483 = dma.done.wait [#allocation3], 128  }
  0x34   :  { %484 = vsyncadd [#allocation3], 4294967168 }
  0x35   :  { %485 = dma.done.wait [#allocation6], 1408  }
  0x36   :  { %486 = vsyncadd [#allocation6], 4294965888  ;;  %v494_v0 = vmov 0.0   ;;  %vm495_vm0 = vmmov 0   ;;  %v371_v1 = vld [vmem:[#allocation5] sm:$0xff]   ;;  %v372_v2 = vld [vmem:[#allocation5 + $0x8] sm:$0xff]   ;;  %v261_v31 = vlaneseq }
  0x37   :  { %331 = vmatprep.subr.bf16.mxu0 %v494_v0  ;;  %337 = vmatprep.mubr.msk.bf16.mxu0 %vm495_vm0, %v494_v0  ;;  %v373_v3 = vld [vmem:[#allocation5 + $0x10] sm:$0xff]   ;;  %v374_v4 = vld [vmem:[#allocation2] sm:$0xff]   ;;  %vm98_vm1 = vcmask 392192   ;;  %v376_v6 = vld [vmem:[#allocation7 + $0x8] sm:$0xff]  }
  0x38   :  { %341 = vmatprep.subr.bf16.mxu1 %v494_v0  ;;  %357 = vmatprep.mubr.msk.bf16.mxu1 %vm495_vm0, %v494_v0  ;;  %v375_v5 = vld [vmem:[#allocation7] sm:$0xff]   ;;  %v377_v7 = vld [vmem:[#allocation7 + $0x10] sm:$0xff]   ;;  %v378_v17 = vld [vmem:[#allocation7 + $0x18] sm:$0xff]   ;;  %v262_v32 = vand.u32 127, %v261_v31 }
  0x39   :  { %332 = vmatpush3.bf16.msra.mxu0 %v371_v1  ;;  %342 = vmatpush3.bf16.msra.mxu1 %v375_v5  ;;  %v304_v8 = vld [vmem:[%s593_s2] ss:$0 sm:$0xff]  ;;  %v380_v19 = vld [vmem:[#allocation7 + $0x28] sm:$0xff]   ;;  %v381_v20 = vld [vmem:[#allocation7 + $0x30] sm:$0xff]   ;;  %s496_s2 = smov [#allocation8]  }
  0x3a   :  { %333 = vmatprep.subr.bf16.mxu0 %v494_v0  ;;  %343 = vmatprep.subr.bf16.mxu1 %v494_v0  ;;  %v379_v18 = vld [vmem:[#allocation7 + $0x20] sm:$0xff]   ;;  %v382_v21 = vld [vmem:[#allocation7 + $0x38] sm:$0xff]   ;;  %vm263_vm2 = vcmp.lt.s32.totalorder %v262_v32, 5  ;;  %s291_s26 = sshll.u32 %s496_s2, 4  ;;  %s292_s26 = int_to_ptr.vmem [resolvable:$true] %s291_s26 }
  0x3b   :  { %s461_s27 = scalar_lea.vmem %s292_s26, 256  ;;  %p466_p11 = scmp.lt.s32.totalorder %s292_s26, %s292_s26 }
  0x3c   :  { %p462_p10 = scmp.ne.s32.totalorder %s292_s26, %s461_s27  ;;  %p467_p12 = scmp.lt.s32.totalorder %s461_s27, %s461_s27 }
  0x3d   :  { %334 = vmatpush3.bf16.msra.mxu0 %v372_v2  ;;  %344 = vmatpush3.bf16.msra.mxu1 %v376_v6 }
  0x3e   :  { %335 = vmatprep.subr.bf16.mxu0 %v494_v0  ;;  %345 = vmatprep.subr.bf16.mxu1 %v494_v0  ;;  %p468_p13 = por %p467_p12, %p466_p11 }
  0x40   :  { %p469_p0 = pnand %p468_p13, %p462_p10 }
  0x41   :  { %336 = vmatpush3.bf16.msra.mxu0 %v373_v3  ;;  %346 = vmatpush3.bf16.msra.mxu1 %v377_v7 }
  0x42   :  { %347 = vmatprep.subr.bf16.mxu1 %v494_v0 }
  0x44   :  { %338 = vmatmul.mubr.msk.bf16.vlgmr.msra.gmra.mrb[0].mxu0 %vm98_vm1, %v374_v4 }
  0x45   :  { %348 = vmatpush3.bf16.msra.mxu1 %v378_v17 }
  0x46   :  { %349 = vmatprep.subr.bf16.mxu1 %v494_v0 }
  0x49   :  { %350 = vmatpush3.bf16.msra.mxu1 %v379_v18 }
  0x4a   :  { %351 = vmatprep.subr.bf16.mxu1 %v494_v0 }
  0x4d   :  { %352 = vmatpush3.bf16.msra.mxu1 %v380_v19 }
  0x4e   :  { %353 = vmatprep.subr.bf16.mxu1 %v494_v0 }
  0x51   :  { %354 = vmatpush3.bf16.msra.mxu1 %v381_v20 }
  0x52   :  { %355 = vmatprep.subr.bf16.mxu1 %v494_v0 }
  0x55   :  { %356 = vmatpush3.bf16.msra.mxu1 %v382_v21 }
 0x117   :  { %v136_v9 = vpop.f32.mrb[0].mxu0 }
 0x118   :  { %v137_v10 = vadd.f32 %v304_v8, %v136_v9  ;;  %v339_v11 = vpop.f32.mrb[1].mxu0 }
 0x119   :  { %v139_v12 = vpop.f32.mrb[2].mxu0 }
 0x11a   :  { %v140_v13 = vadd.f32 %v304_v8, %v139_v12  ;;  %v340_v14 = vpop.f32.mrb[3].mxu0  ;;  %v143_v15 = vmul.f32 %v137_v10, %v137_v10 }
 0x11c   :  { %145 = vadd.xlane.f32.xlu0 %v143_v15  ;;  %v144_v16 = vmul.f32 %v140_v13, %v140_v13 }
 0x120   :  { %147 = vadd.xlane.f32.xlu0 %v144_v16 }
 0x1a9   :  { %v146_v22 = vpop.xlane.xlu0 %145 }
 0x1aa   :  { %v149_v23 = vadd.f32 1e-12, %v146_v22 }
 0x1ac   :  { %383 = vrsqrt.f32 %v149_v23 }
 0x1ad   :  { %v148_v24 = vpop.xlane.xlu0 %147 }
 0x1ae   :  { %v150_v25 = vadd.f32 1e-12, %v148_v24 }
 0x1b0   :  { %385 = vrsqrt.f32 %v150_v25 }
 0x1b6   :  { %v384_v26 = vpop.eup %383 }
 0x1b7   :  { %v153_v28 = vmul.f32 %v384_v26, %v137_v10 }
 0x1ba   :  { %v386_v27 = vpop.eup %385 }
 0x1bb   :  { %v154_v29 = vmul.f32 %v386_v27, %v140_v13 }
 0x1bd   :  { %v155_v30 = vpack.c.bf16 %v154_v29, %v153_v28 }
 0x1bf   :  { %358 = vmatmul.mubr.bf16.vlgmr.msra.gmra.mrb[0].mxu1 %v155_v30 }
 0x292   :  { %v254_v33 = vpop.f32.mrb[0].mxu1 }
 0x293   :  { %v359_v34 = vpop.f32.mrb[1].mxu1  ;;  %v264_v35 = vsel %vm263_vm2, %v254_v33, -1e+30 }
 0x294   :  { %266 = vmax.xlane.f32.xlu1 %v264_v35  ;;  %v257_v36 = vpop.f32.mrb[2].mxu1 }
 0x295   :  { %v360_v37 = vpop.f32.mrb[3].mxu1  ;;  %v265_v38 = vsel %vm263_vm2, %v257_v36, -1e+30 }
 0x298   :  { %268 = vmax.xlane.f32.xlu1 %v265_v38 }
 0x321   :  { %v267_v39 = vpop.xlane.xlu1 %266 }
 0x322   :  { %v270_v40 = vsub.f32 %v264_v35, %v267_v39 }
 0x324   :  { %v272_v41 = vmul.f32 1.442695, %v270_v40 }
 0x325   :  { %v269_v42 = vpop.xlane.xlu1 %268 }
 0x326   :  { %387 = vpow2.f32 %v272_v41  ;;  %v271_v43 = vsub.f32 %v265_v38, %v269_v42 }
 0x328   :  { %v274_v44 = vmul.f32 1.442695, %v271_v43 }
 0x32a   :  { %389 = vpow2.f32 %v274_v44 }
 0x330   :  { %v388_v45 = vpop.eup %387 }
 0x331   :  { %276 = vadd.xlane.f32.xlu0 %v388_v45 }
 0x334   :  { %v390_v46 = vpop.eup %389 }
 0x335   :  { %278 = vadd.xlane.f32.xlu1 %v390_v46 }
 0x3be   :  { %v277_v47 = vpop.xlane.xlu0 %276 }
 0x3bf   :  { %391 = vrcp.f32 %v277_v47 }
 0x3c2   :  { %v279_v48 = vpop.xlane.xlu1 %278 }
 0x3c3   :  { %393 = vrcp.f32 %v279_v48 }
 0x3c9   :  { %v392_v49 = vpop.eup %391 }
 0x3ca   :  { %v282_v50 = vmul.f32 %v392_v49, %v388_v45 }
 0x3cc   :  { %284 = vst [vmem:[#allocation8] sm:$0xff] %v282_v50 }
 0x3cd   :  { %v394_v51 = vpop.eup %393 }
 0x3ce   :  { %v283_v52 = vmul.f32 %v394_v51, %v390_v46 }
 0x3d0   :  { %285 = vst [vmem:[#allocation8 + $0x8] sm:$0xff] %v283_v52 }
 0x3d1   :  { %472 = shalt.err (!%p469_p0)
}
 0x3d2   :  { %s473_s30 = scalar_lea.hbm %s595_s4, 256 }
 0x3d3   :  { %p474_p1 = scmp.ne.s32.totalorder %s595_s4, %s473_s30  ;;  %p477_p2 = scmp.lt.u32.totalorder %s473_s30, %s595_s4 }
 0x3d5   :  { %p479_p3 = pnand %p477_p2, %p474_p1 }
 0x3d7   :  { %482 = shalt.err (!%p479_p3)
}
 0x3d8   :  { %s497_s9 = smov 128   ;;  %s498_s10 = smov 8  }
 0x3d9   :  { %297 = dma.vmem_to_hbm [thread:$0]  %s292_s26, 256, %s595_s4, [#allocation4], %s497_s9, %s497_s9, %s498_s10  }
 0x3da   :  { %487 = dma.done.wait [#allocation4], 256  }
 0x3db   :  { %488 = vsyncadd [#allocation4], 4294967040 }
 0x3dc   :  { %301 = vsyncpa [#allocation3], 1 }
 0x3dd   :  { %302 = vsyncpa [#allocation6], 1 }
 0x3de   :  { %303 = vsyncpa [#allocation4], 1 }

</bundles_post_ra>
